<compile_context>
chip_gen: v5e
topology: v5e:2x2
jax: 0.10.0
libtpu: 0.0.40
codegen_flags: <defaults>
</compile_context>

<pallas_src>
import jax
import jax.numpy as jnp
from jax.experimental import pallas as pl
from jax.experimental.pallas import tpu as pltpu


def _conv1x1_bn_silu_kernel(ue_ref, uo_ref, w_ref, bias_ref, o_ref):
    """One (batch, spatial-tile) grid step.

    ue_ref  : (1, C, t_s) uint32  even image rows; lane j packs columns (2j, 2j+1)
    uo_ref  : (1, C, t_s) uint32  odd image rows
    w_ref   : (4, C_out, C) bf16  BN-folded 1x1 conv weight, phase-major (tl,tr,bl,br)
    bias_ref: (C_out, 1)   f32    folded BatchNorm bias (beta - mean*gamma/std)
    o_ref   : (1, C_out, t_s)     output tile (NCHW order, flat lane-dense spatial)
    """
    ue = ue_ref[0]                                  # (C, t_s) uint32
    uo = uo_ref[0]

    # bf16 bit pattern b widens exactly to f32 with bits (b << 16).
    # Low 16 bits of a packed lane = even column, high 16 bits = odd column.
    def even_phase(u):
        return pltpu.bitcast(u << 16, jnp.float32).astype(jnp.bfloat16)

    def odd_phase(u):
        return pltpu.bitcast((u >> 16) << 16, jnp.float32).astype(jnp.bfloat16)

    tl = even_phase(ue)                             # (C, t_s)
    tr = odd_phase(ue)
    bl = even_phase(uo)
    br = odd_phase(uo)

    # Four tiny MXU matmuls with f32 accumulation (contraction over C each).
    y = jnp.dot(w_ref[0], tl, preferred_element_type=jnp.float32)
    y += jnp.dot(w_ref[1], tr, preferred_element_type=jnp.float32)
    y += jnp.dot(w_ref[2], bl, preferred_element_type=jnp.float32)
    y += jnp.dot(w_ref[3], br, preferred_element_type=jnp.float32)

    y += bias_ref[...]                              # folded BatchNorm (f32 epilogue)
    o_ref[0] = (y * jax.nn.sigmoid(y)).astype(o_ref.dtype)   # SiLU


def _choose_spatial_tile(S, C, C_out, out_itemsize, batch, vmem_budget):
    """Spatial (lane) tile: a divisor of S, VMEM-budgeted, 128-aligned when possible."""
    # Bytes resident in VMEM per spatial element: double-buffered u32 input blocks
    # and output block, plus single-copy f32/bf16 unpack intermediates and the
    # f32 accumulator (per review: budget the f32 intermediates explicitly).
    per_elem = (2 * 2 * C * 4) + (2 * C_out * out_itemsize) + (4 * C * 6) + (4 * C_out)
    cap = max(128, vmem_budget // per_elem)
    cap = min(cap, 32768)                       # diminishing returns beyond ~32K lanes
    if batch < 2 and S >= 256:
        cap = min(cap, max(128, S // 2))        # >=2 grid steps -> v7x megacore split

    divs, d = [], 1
    while d * d <= S:
        if S % d == 0:
            divs += [d, S // d]
        d += 1
    divs = sorted({x for x in divs if x <= cap})
    lane_aligned = [x for x in divs if x % 128 == 0]
    if lane_aligned:
        return lane_aligned[-1], per_elem       # lane-dense, no padding, no slice
    if divs and divs[-1] >= 512:
        return divs[-1], per_elem               # unaligned but still a divisor of S
    return S, per_elem                          # tiny / awkward S: one full-extent block


def space_to_depth_forward(x_nchw, weight, gamma, beta, running_mean, running_var,
                           eps=1e-5, compute_dtype=jnp.bfloat16,
                           out_dtype=jnp.bfloat16, vmem_budget=12 << 20):
    """x_nchw: (B, C, H, W); weight: (C_out, 4*C) 1x1 conv weight (torch layout,
    channel order of cat((tl, tr, bl, br), dim=1) as in the reference module).

    Returns (B, C_out, H//2, W//2) in out_dtype (bf16 by default to halve the
    output HBM stream; pass jnp.float32 to match torch's dtype exactly).
    """
    B, C, H, W = x_nchw.shape
    C_out, K = weight.shape
    assert K == 4 * C, "weight must be (C_out, 4*C_in)"
    assert H % 2 == 0 and W % 2 == 0, "SpaceToDepth needs even spatial dims"
    assert jnp.dtype(compute_dtype).itemsize == 2, "pair packing needs a 16-bit compute dtype"
    H2, W2 = H // 2, W // 2
    S = H2 * W2

    # --- single element-wise XLA pass over x: cast to bf16 and pack each horizontal
    # pixel pair into one uint32 lane (even column -> low 16 bits).  Row parity is
    # split into two flat (B, C, S) streams so the kernel's matmuls stay 2-D.
    bits = jax.lax.bitcast_convert_type(x_nchw.astype(compute_dtype), jnp.uint16)
    bits = bits.astype(jnp.uint32).reshape(B, C, H2, 2, W2, 2)
    packed = bits[..., 0] | (bits[..., 1] << 16)            # (B, C, H2, 2, W2)
    u_even = packed[:, :, :, 0, :].reshape(B, C, S)          # original rows 0, 2, 4, ...
    u_odd = packed[:, :, :, 1, :].reshape(B, C, S)           # original rows 1, 3, 5, ...

    # --- fold eval-mode BatchNorm into the weight; keep only a per-channel bias.
    inv_std = jax.lax.rsqrt(running_var.astype(jnp.float32) + eps)
    scale = gamma.astype(jnp.float32) * inv_std                                  # (C_out,)
    bias = beta.astype(jnp.float32) - running_mean.astype(jnp.float32) * scale   # (C_out,)
    w_scaled = weight.astype(jnp.float32) * scale[:, None]                       # (C_out, 4C)
    # Phase-major weight (tl, tr, bl, br) matching the module's cat order.
    # NOTE: real YOLOX Focus uses cat(tl, bl, tr, br); permute here if loading such weights.
    w4 = w_scaled.reshape(C_out, 4, C).transpose(1, 0, 2).astype(compute_dtype)  # (4, C_out, C)
    bias2d = bias.reshape(C_out, 1)

    out_itemsize = jnp.dtype(out_dtype).itemsize
    t_s, per_elem = _choose_spatial_tile(S, C, C_out, out_itemsize, B, vmem_budget)
    grid = (B, S // t_s)   # both axes independent -> shard across v7x's 2 TensorCores

    weight_bytes = 4 * C_out * C * jnp.dtype(compute_dtype).itemsize + C_out * 4
    vmem_limit = int(min(32 << 20,
                         max(4 << 20, per_elem * t_s + weight_bytes + (2 << 20))))

    out = pl.pallas_call(
        _conv1x1_bn_silu_kernel,
        out_shape=jax.ShapeDtypeStruct((B, C_out, S), out_dtype),
        grid_spec=pltpu.PrefetchScalarGridSpec(
            num_scalar_prefetch=0,
            grid=grid,
            in_specs=[
                pl.BlockSpec((1, C, t_s), lambda b, s: (b, 0, s)),       # even rows
                pl.BlockSpec((1, C, t_s), lambda b, s: (b, 0, s)),       # odd rows
                pl.BlockSpec((4, C_out, C), lambda b, s: (0, 0, 0)),     # resident weight
                pl.BlockSpec((C_out, 1), lambda b, s: (0, 0)),           # resident bias
            ],
            out_specs=pl.BlockSpec((1, C_out, t_s), lambda b, s: (b, 0, s)),
        ),
        compiler_params=pltpu.CompilerParams(
            dimension_semantics=("parallel", "parallel"),
            vmem_limit_bytes=vmem_limit,
        ),
    )(u_even, u_odd, w4, bias2d)

    return out.reshape(B, C_out, H2, W2)


if __name__ == "__main__":
    key = jax.random.PRNGKey(0)
    k_x, k_w, k_g, k_b, k_m, k_v = jax.random.split(key, 6)

    B, C, H, W = 2, 4, 16, 16
    C_out = 8
    K = 4 * C

    x = jax.random.normal(k_x, (B, C, H, W), dtype=jnp.float32)

    # Conv2d weight (C_out, 4C, 1, 1) -> (C_out, 4C); BN eval-mode parameters.
    weight = jax.random.normal(k_w, (C_out, K), dtype=jnp.float32) * 0.1
    gamma = jax.random.normal(k_g, (C_out,), dtype=jnp.float32) * 0.1 + 1.0
    beta = jax.random.normal(k_b, (C_out,), dtype=jnp.float32) * 0.1
    running_mean = jax.random.normal(k_m, (C_out,), dtype=jnp.float32) * 0.1
    running_var = jax.nn.softplus(jax.random.normal(k_v, (C_out,), dtype=jnp.float32)) + 0.5

    fwd = jax.jit(space_to_depth_forward)
    out = jax.block_until_ready(fwd(x, weight, gamma, beta, running_mean, running_var))

    # Pure-JAX f32 reference (torch semantics: slice-concat -> 1x1 conv -> BN -> SiLU).
    tl = x[..., ::2, ::2]; tr = x[..., ::2, 1::2]
    bl = x[..., 1::2, ::2]; br = x[..., 1::2, 1::2]
    x4_ref = jnp.concatenate((tl, tr, bl, br), axis=1)
    y_ref = jnp.einsum('bkhw,ok->bohw', x4_ref, weight)
    inv_std = 1.0 / jnp.sqrt(running_var + 1e-5)
    y_ref = (y_ref - running_mean[None, :, None, None]) * inv_std[None, :, None, None]
    y_ref = y_ref * gamma[None, :, None, None] + beta[None, :, None, None]
    y_ref = y_ref * jax.nn.sigmoid(y_ref)

    assert out.shape == (B, C_out, H // 2, W // 2)
    # bf16 matmul inputs / bf16 output -> loosened tolerance vs the f32 reference.
    assert jnp.allclose(out.astype(jnp.float32), y_ref, atol=5e-2, rtol=5e-2), \
        float(jnp.max(jnp.abs(out.astype(jnp.float32) - y_ref)))
    print("KERNEL_OK")
</pallas_src>

<mosaic_0001>
module attributes {stable_mosaic.version = 11 : i64} {
  func.func @_conv1x1_bn_silu_kernel(%arg0: i32, %arg1: i32, %arg2: memref<1x4x64xi32, #tpu.memory_space<vmem>>, %arg3: memref<1x4x64xi32, #tpu.memory_space<vmem>>, %arg4: memref<4x8x4xbf16, #tpu.memory_space<vmem>>, %arg5: memref<8x1xf32, #tpu.memory_space<vmem>>, %arg6: memref<1x8x64xbf16, #tpu.memory_space<vmem>>) attributes {dimension_semantics = [#tpu.dimension_semantics<parallel>, #tpu.dimension_semantics<parallel>], iteration_bounds = array<i64: 2, 1>, scalar_prefetch = 0 : i64, scratch_operands = 0 : i64, tpu.core_type = #tpu.core_type<tc>, window_params = [{transform_indices = @transform_0, window_bounds = array<i64: 1, 4, 64>}, {transform_indices = @transform_1, window_bounds = array<i64: 1, 4, 64>}, {pipeline_mode = #tpu.pipeline_mode<synchronous>, transform_indices = @transform_2, window_bounds = array<i64: 4, 8, 4>}, {pipeline_mode = #tpu.pipeline_mode<synchronous>, transform_indices = @transform_3, window_bounds = array<i64: 8, 1>}, {transform_indices = @transform_4, window_bounds = array<i64: 1, 8, 64>}]} {
    %c0 = arith.constant 0 : index
    %c0_0 = arith.constant 0 : index
    %c0_1 = arith.constant 0 : index
    %0 = vector.load %arg2[%c0, %c0_0, %c0_1] : memref<1x4x64xi32, #tpu.memory_space<vmem>>, vector<1x4x64xi32>
    %1 = vector.shape_cast %0 : vector<1x4x64xi32> to vector<4x64xi32>
    %c0_2 = arith.constant 0 : index
    %c0_3 = arith.constant 0 : index
    %c0_4 = arith.constant 0 : index
    %2 = vector.load %arg3[%c0_2, %c0_3, %c0_4] : memref<1x4x64xi32, #tpu.memory_space<vmem>>, vector<1x4x64xi32>
    %3 = vector.shape_cast %2 : vector<1x4x64xi32> to vector<4x64xi32>
    %c16_i32 = arith.constant 16 : i32
    %4 = vector.broadcast %c16_i32 : i32 to vector<4x64xi32>
    %5 = arith.shli %1, %4 : vector<4x64xi32>
    %6 = tpu.bitcast %5 : vector<4x64xi32> -> vector<4x64xf32>
    %7 = arith.truncf %6 : vector<4x64xf32> to vector<4x64xbf16>
    %c16_i32_5 = arith.constant 16 : i32
    %8 = vector.broadcast %c16_i32_5 : i32 to vector<4x64xi32>
    %9 = arith.shrui %1, %8 : vector<4x64xi32>
    %c16_i32_6 = arith.constant 16 : i32
    %10 = vector.broadcast %c16_i32_6 : i32 to vector<4x64xi32>
    %11 = arith.shli %9, %10 : vector<4x64xi32>
    %12 = tpu.bitcast %11 : vector<4x64xi32> -> vector<4x64xf32>
    %13 = arith.truncf %12 : vector<4x64xf32> to vector<4x64xbf16>
    %c16_i32_7 = arith.constant 16 : i32
    %14 = vector.broadcast %c16_i32_7 : i32 to vector<4x64xi32>
    %15 = arith.shli %3, %14 : vector<4x64xi32>
    %16 = tpu.bitcast %15 : vector<4x64xi32> -> vector<4x64xf32>
    %17 = arith.truncf %16 : vector<4x64xf32> to vector<4x64xbf16>
    %c16_i32_8 = arith.constant 16 : i32
    %18 = vector.broadcast %c16_i32_8 : i32 to vector<4x64xi32>
    %19 = arith.shrui %3, %18 : vector<4x64xi32>
    %c16_i32_9 = arith.constant 16 : i32
    %20 = vector.broadcast %c16_i32_9 : i32 to vector<4x64xi32>
    %21 = arith.shli %19, %20 : vector<4x64xi32>
    %22 = tpu.bitcast %21 : vector<4x64xi32> -> vector<4x64xf32>
    %23 = arith.truncf %22 : vector<4x64xf32> to vector<4x64xbf16>
    %c0_10 = arith.constant 0 : index
    %c0_11 = arith.constant 0 : index
    %c0_12 = arith.constant 0 : index
    %24 = vector.load %arg4[%c0_10, %c0_11, %c0_12] : memref<4x8x4xbf16, #tpu.memory_space<vmem>>, vector<1x8x4xbf16>
    %25 = vector.shape_cast %24 : vector<1x8x4xbf16> to vector<8x4xbf16>
    %cst = arith.constant dense<0.000000e+00> : vector<8x64xf32>
    %26 = tpu.matmul %25, %7, %cst {dimension_numbers = #tpu.dot_dimension_numbers<[1], [0], [0], [1], [0, 0, 1, 1], [], []>} : vector<8x4xbf16>, vector<4x64xbf16>, vector<8x64xf32> -> vector<8x64xf32>
    %c1 = arith.constant 1 : index
    %c0_13 = arith.constant 0 : index
    %c0_14 = arith.constant 0 : index
    %27 = vector.load %arg4[%c1, %c0_13, %c0_14] : memref<4x8x4xbf16, #tpu.memory_space<vmem>>, vector<1x8x4xbf16>
    %28 = vector.shape_cast %27 : vector<1x8x4xbf16> to vector<8x4xbf16>
    %cst_15 = arith.constant dense<0.000000e+00> : vector<8x64xf32>
    %29 = tpu.matmul %28, %13, %cst_15 {dimension_numbers = #tpu.dot_dimension_numbers<[1], [0], [0], [1], [0, 0, 1, 1], [], []>} : vector<8x4xbf16>, vector<4x64xbf16>, vector<8x64xf32> -> vector<8x64xf32>
    %30 = arith.addf %26, %29 : vector<8x64xf32>
    %c2 = arith.constant 2 : index
    %c0_16 = arith.constant 0 : index
    %c0_17 = arith.constant 0 : index
    %31 = vector.load %arg4[%c2, %c0_16, %c0_17] : memref<4x8x4xbf16, #tpu.memory_space<vmem>>, vector<1x8x4xbf16>
    %32 = vector.shape_cast %31 : vector<1x8x4xbf16> to vector<8x4xbf16>
    %cst_18 = arith.constant dense<0.000000e+00> : vector<8x64xf32>
    %33 = tpu.matmul %32, %17, %cst_18 {dimension_numbers = #tpu.dot_dimension_numbers<[1], [0], [0], [1], [0, 0, 1, 1], [], []>} : vector<8x4xbf16>, vector<4x64xbf16>, vector<8x64xf32> -> vector<8x64xf32>
    %34 = arith.addf %30, %33 : vector<8x64xf32>
    %c3 = arith.constant 3 : index
    %c0_19 = arith.constant 0 : index
    %c0_20 = arith.constant 0 : index
    %35 = vector.load %arg4[%c3, %c0_19, %c0_20] : memref<4x8x4xbf16, #tpu.memory_space<vmem>>, vector<1x8x4xbf16>
    %36 = vector.shape_cast %35 : vector<1x8x4xbf16> to vector<8x4xbf16>
    %cst_21 = arith.constant dense<0.000000e+00> : vector<8x64xf32>
    %37 = tpu.matmul %36, %23, %cst_21 {dimension_numbers = #tpu.dot_dimension_numbers<[1], [0], [0], [1], [0, 0, 1, 1], [], []>} : vector<8x4xbf16>, vector<4x64xbf16>, vector<8x64xf32> -> vector<8x64xf32>
    %38 = arith.addf %34, %37 : vector<8x64xf32>
    %c0_22 = arith.constant 0 : index
    %c0_23 = arith.constant 0 : index
    %39 = vector.load %arg5[%c0_22, %c0_23] : memref<8x1xf32, #tpu.memory_space<vmem>>, vector<8x1xf32>
    %40 = vector.broadcast %39 : vector<8x1xf32> to vector<8x64xf32>
    %41 = arith.addf %38, %40 : vector<8x64xf32>
    %42 = arith.negf %41 : vector<8x64xf32>
    %43 = math.exp %42 : vector<8x64xf32>
    %cst_24 = arith.constant 1.000000e+00 : f32
    %44 = vector.broadcast %cst_24 : f32 to vector<8x64xf32>
    %45 = arith.addf %44, %43 : vector<8x64xf32>
    %46 = arith.divf %44, %45 : vector<8x64xf32>
    %47 = arith.mulf %41, %46 : vector<8x64xf32>
    %48 = arith.truncf %47 : vector<8x64xf32> to vector<8x64xbf16>
    %c0_25 = arith.constant 0 : index
    %c0_26 = arith.constant 0 : index
    %c0_27 = arith.constant 0 : index
    %49 = vector.load %arg6[%c0_25, %c0_26, %c0_27] : memref<1x8x64xbf16, #tpu.memory_space<vmem>>, vector<1x8x64xbf16>
    %50 = vector.shape_cast %49 : vector<1x8x64xbf16> to vector<8x64xbf16>
    %51 = vector.shape_cast %48 : vector<8x64xbf16> to vector<1x8x64xbf16>
    tpu.vector_store %arg6[%c0_25, %c0_26, %c0_27], %51 {strides = array<i32>} : memref<1x8x64xbf16, #tpu.memory_space<vmem>>, vector<1x8x64xbf16>,
    return
  }
  func.func @transform_0(%arg0: i32, %arg1: i32) -> (i32, i32, i32) {
    %c0_i32 = arith.constant 0 : i32
    %c0_i32_0 = arith.constant 0 : i32
    return %arg0, %c0_i32, %arg1 : i32, i32, i32
  }
  func.func @transform_1(%arg0: i32, %arg1: i32) -> (i32, i32, i32) {
    %c0_i32 = arith.constant 0 : i32
    %c0_i32_0 = arith.constant 0 : i32
    return %arg0, %c0_i32, %arg1 : i32, i32, i32
  }
  func.func @transform_2(%arg0: i32, %arg1: i32) -> (i32, i32, i32) {
    %c0_i32 = arith.constant 0 : i32
    %c0_i32_0 = arith.constant 0 : i32
    %c0_i32_1 = arith.constant 0 : i32
    %c0_i32_2 = arith.constant 0 : i32
    return %c0_i32, %c0_i32_0, %c0_i32_1 : i32, i32, i32
  }
  func.func @transform_3(%arg0: i32, %arg1: i32) -> (i32, i32) {
    %c0_i32 = arith.constant 0 : i32
    %c0_i32_0 = arith.constant 0 : i32
    %c0_i32_1 = arith.constant 0 : i32
    return %c0_i32, %c0_i32_0 : i32, i32
  }
  func.func @transform_4(%arg0: i32, %arg1: i32) -> (i32, i32, i32) {
    %c0_i32 = arith.constant 0 : i32
    %c0_i32_0 = arith.constant 0 : i32
    return %arg0, %c0_i32, %arg1 : i32, i32, i32
  }
}

</mosaic_0001>

<bundles_post_ra>
// kernel: space_to_depth_forward.1
= control target key start
LH: loop header
LB: loop body
LE: loop exit
PB: predicated region body
PF: predicated region fallthrough
CT: control target
= control target key end

     0   :  { %s573_s15 = smov 0   ;;  %s575_s16 = smov 0   ;;  %s633_s0 = inlined_call_operand.vmem [shape: u32[2,4,64], index: 0, kind: input, shape index: {}]   ;;  %s634_s1 = inlined_call_operand.vmem [shape: u32[2,4,64], index: 1, kind: input, shape index: {}]   ;;  %s635_s2 = inlined_call_operand.vmem [shape: bf16[4,8,4], index: 2, kind: input, shape index: {}]   ;;  %s636_s3 = inlined_call_operand.vmem [shape: f32[8,1], index: 3, kind: input, shape index: {}]   ;;  %s637_s4 = inlined_call_operand.vmem [shape: bf16[2,8,64], index: 4, kind: output, shape index: {}]  }
   0x1   :  { %s577_s17 = smov 0  }
   0x2 LB: > { %s26_s18 = sadd.s32 1, %s541_s16  ;;  %p479_p0 = scmp.ge.s32.totalorder %s545_s17, 1  ;;  %s545_s17 = sphi %s577_s17, %s14_s17   ;;  %s541_s16 = sphi %s575_s16, %s639_s16   ;;  %s537_s15 = sphi %s573_s15, %s638_s15  }
   0x3   : > { %p28_p1 = scmp.ge.s32.totalorder %s26_s18, 2  ;;  %p194_p2 = scmp.lt.s32.totalorder %s545_s17, 3 }
   0x5   : > { %s641_s18 = smov (%p28_p1, %s26_s18), 0  ;;  %p195_p3 = pnand %p479_p0, %p194_p2 }
   0x6   : > { %p231_p4 = scmp.lt.s32.totalorder (!%p195_p3), %s537_s15, 1 }
   0x7   : > { %198 = sbr.rel (%p195_p3) target bundleno = 196 (0xc4), region = 36 }
   0xc   : > { %v547_v0 = vmov 0   ;;  %s643_s15 = smov (!%p231_p4, %s537_s15), 1  ;;  %v356_v1 = vld [vmem:[%s636_s3] sm:$0xff]  ;;  %vm276_vm0 = vcmask 1041408   ;;  %vm272_vm1 = vcmask 31744   ;;  %vm384_vm6 = vcmask 519168  }
   0xd   : > { %518 = vset.pattern.permute.xlu0 %v547_v0  ;;  %s594_s21 = sshll.u32 %s643_s15, 2  ;;  %v269_v16 = vld [vmem:[%s635_s2] sm:$0xf]  ;;  %v486_v18 = vld [vmem:[%s635_s2 + $0x8] sm:$0xf] }
   0xe   : > { %359 = vperm.xlu0 %518, %v356_v1   ;;  %s237_s24 = scalar_lea.vmem %s633_s0, %s594_s21  ;;  %s244_s27 = scalar_lea.vmem %s634_s1, %s594_s21  ;;  %v483_v20 = vld [vmem:[%s635_s2 + $0x4] sm:$0xf]  ;;  %v488_v21 = vld [vmem:[%s635_s2 + $0xc] sm:$0xf] }
   0xf   : > { %v253_v2 = vld [vmem:[%s237_s24] sm:$0xf]  ;;  %s251_s12 = scalar_lea.vmem %s637_s4, %s594_s21 }
  0x10   : > { %v255_v3 = vshll.u32 %v253_v2, 16  ;;  %v254_v4 = vld [vmem:[%s244_s27] sm:$0xf]  ;;  %v258_v5 = vshrl.u32 %v253_v2, 16 }
  0x11   : > { %v262_v6 = vshll.u32 %v254_v4, 16  ;;  %v265_v7 = vshrl.u32 %v254_v4, 16 }
  0x12   : > { %v257_v8 = vpack.c.bf16 %v255_v3, %v255_v3  ;;  %v259_v9 = vshll.u32 %v258_v5, 16 }
  0x13   : > { %v264_v10 = vpack.c.bf16 %v262_v6, %v262_v6  ;;  %v266_v11 = vshll.u32 %v265_v7, 16 }
  0x14   : > { %v297_v12 = vsel %vm276_vm0, %v257_v8, 0  ;;  %v261_v13 = vpack.c.bf16 %v259_v9, %v259_v9 }
  0x15   : > { %306 = vmatpush.bf16.msra.mxu1 %v297_v12  ;;  %v318_v14 = vsel %vm276_vm0, %v264_v10, 0  ;;  %v268_v15 = vpack.c.bf16 %v266_v11, %v266_v11 }
  0x16   : > { %327 = vmatpush.bf16.msra.mxu2 %v318_v14  ;;  %v278_v17 = vsel %vm276_vm0, %v261_v13, 0 }
  0x17   : > { %287 = vmatpush.bf16.msra.mxu0 %v278_v17  ;;  %v340_v19 = vsel %vm276_vm0, %v268_v15, 0 }
  0x18   : > { %349 = vmatpush.bf16.msra.mxu3 %v340_v19  ;;  %485 = vmatmul.msk.bf16.vlgmr.msra.gmra.mxu1 %vm272_vm1, %v269_v16 }
  0x19   : > { %487 = vmatmul.msk.bf16.vlgmr.msra.gmra.mxu2 %vm272_vm1, %v486_v18 }
  0x1a   : > { %484 = vmatmul.msk.bf16.vlgmr.msra.gmra.mxu0 %vm272_vm1, %v483_v20 }
  0x1b   : > { %489 = vmatmul.msk.bf16.vlgmr.msra.gmra.mxu3 %vm272_vm1, %v488_v21 }
  0x80   : > { %v360_v29 = vpop.permute.xlu0 %359 }
  0x95   : > { %v308_v22 = vpop.f32.mrf.mxu1 }
  0x97   : > { %v289_v23 = vpop.f32.mrf.mxu0 }
  0x98   : > { %v309_v24 = vadd.f32 %v308_v22, %v289_v23 }
  0x9c   : > { %v329_v25 = vpop.f32.mrf.mxu2 }
  0x9d   : > { %v333_v26 = vadd.f32 %v329_v25, %v309_v24  ;;  %v310_v27 = vpop.f32.mrf.mxu1 }
  0x9e   : > { %v351_v28 = vpop.f32.mrf.mxu3 }
  0x9f   : > { %v355_v30 = vadd.f32 %v351_v28, %v333_v26  ;;  %v291_v31 = vpop.f32.mrf.mxu0 }
  0xa1   : > { %v362_v32 = vadd.f32 %v360_v29, %v355_v30 }
  0xa3   : > { %v490_v33 = vmul.f32 -1.442695, %v362_v32 }
  0xa4   : > { %v331_v34 = vpop.f32.mrf.mxu2 }
  0xa5   : > { %519 = vpow2.f32 %v490_v33 }
  0xa6   : > { %v353_v35 = vpop.f32.mrf.mxu3 }
  0xab   : > { %v520_v36 = vpop.eup %519 }
  0xac   : > { %v366_v37 = vadd.f32 1.0, %v520_v36 }
  0xae   : > { %521 = vrcp.f32 %v366_v37  ;;  %v378_v41 = vand.u32 2147483648, %v366_v37  ;;  %v376_v43 = vand.u32 2147483647, %v366_v37  ;;  %vm372_vm3 = vweird.f32 %v366_v37 }
  0xb0   : > { %v379_v45 = vor.u32 1.1754944e-38, %v378_v41  ;;  %vm377_vm5 = vcmp.eq.f32.partialorder %v376_v43, 8.507059e+37 }
  0xb4   : > { %v522_v38 = vpop.eup %521 }
  0xb5   : > { %v368_v39 = vmul.f32 %v522_v38, %v366_v37  ;;  %vm373_vm2 = vweird.f32 %v522_v38 }
  0xb6   : > { %vm374_vm4 = vmor %vm372_vm3, %vm373_vm2 }
  0xb7   : > { %v369_v40 = vsub.f32 1.0, %v368_v39 }
  0xb9   : > { %v370_v42 = vmul.f32 %v522_v38, %v369_v40 }
  0xbb   : > { %v371_v44 = vadd.f32 %v522_v38, %v370_v42 }
  0xbd   : > { %v375_v46 = vsel %vm374_vm4, %v522_v38, %v371_v44 }
  0xbe   : > { %v380_v47 = vsel %vm377_vm5, %v379_v45, %v375_v46 }
  0xbf   : > { %v382_v48 = vmul.f32 %v380_v47, %v362_v32 }
  0xc1   : > { %v383_v49 = vpack.c.bf16 %v382_v48, %v382_v48 }
  0xc3   : > { %385 = vst.msk [vmem:[%s251_s12] sm:$0xf] %vm384_vm6, %v383_v49 }
  0xc4 PF: > { %s14_s17 = sadd.s32 1, %s545_s17   ;;  %s638_s15 = smov %s541_s16 }
  0xc5   : > { %p11_p5 = scmp.ge.s32.totalorder %s14_s17, 4   ;;  %s639_s16 = smov %s641_s18 }
  0xc7   :  { %13 = sbr.rel (!%p11_p5) target bundleno = 2 (0x2), region = 72 }

</bundles_post_ra>
